<compile_context>
chip_gen: v5e
topology: v5e:2x2
jax: 0.10.0
libtpu: 0.0.40
codegen_flags: <defaults>
</compile_context>

<pallas_src>
import jax
import jax.numpy as jnp
from jax import lax
from jax.experimental import pallas as pl
from jax.experimental.pallas import tpu as pltpu

LANES = 128
SUBLANES = 8
TILE_ROWS = 1024   # (1024, 128) f32 tile = 512 KiB per input
NCORES = 2         # "parallel" leading axis -> both TCs on v7x; no-op on v5e/v6e


def _make_sums_kernel(tile_rows, per_core, rows, need_mask):
    """Kernel computing per-core partial [sum(yt*yp), sum(yt), sum(yp)] accumulators."""

    def kernel(yt_ref, yp_ref, acc_ref):
        c = pl.program_id(0)   # core-parallel axis
        i = pl.program_id(1)   # reduction (arbitrary) axis

        @pl.when(i == 0)
        def _():
            acc_ref[...] = jnp.zeros_like(acc_ref)

        yt = yt_ref[...].astype(jnp.float32)
        yp = yp_ref[...].astype(jnp.float32)

        if need_mask:
            # Zero out rows past the end of the real data (last partial block /
            # clamped duplicate blocks). `rows`, `per_core`, `tile_rows` are static.
            blk = c * per_core + i
            limit = rows - blk * tile_rows
            row_ids = lax.broadcasted_iota(jnp.int32, (tile_rows, LANES), 0)
            valid = row_ids < limit
            yt = jnp.where(valid, yt, 0.0)
            yp = jnp.where(valid, yp, 0.0)

        # Vreg-wise accumulation: reduce only over the leading (non-tiled) axis,
        # keeping the hot loop on the VPU. Cross-lane/sublane reduction is
        # deferred to the tiny XLA reduce in the wrapper.
        yt8 = yt.reshape(tile_rows // SUBLANES, SUBLANES, LANES)
        yp8 = yp.reshape(tile_rows // SUBLANES, SUBLANES, LANES)

        acc_ref[0, 0] += jnp.sum(yt8 * yp8, axis=0)
        acc_ref[0, 1] += jnp.sum(yt8, axis=0)
        acc_ref[0, 2] += jnp.sum(yp8, axis=0)

    return kernel


def _ftl_sums(y_true_flat, y_pred_flat):
    """Returns (sum(yt*yp), sum(yt), sum(yp)) as f32 scalars via a Pallas kernel."""
    n = y_true_flat.shape[0]
    tile_elems = SUBLANES * LANES  # 1024

    if n % tile_elems != 0:
        # Rare fallback (non-1024-multiple element count): one zero-pad copy so the
        # flat array reshapes to (rows, 128) with rows % 8 == 0. Zero padding
        # contributes 0 to all three sums, so it is exact.
        pad = tile_elems - n % tile_elems
        y_true_flat = jnp.pad(y_true_flat, (0, pad))
        y_pred_flat = jnp.pad(y_pred_flat, (0, pad))

    rows = y_true_flat.shape[0] // LANES
    yt2 = y_true_flat.reshape(rows, LANES)   # contiguous reshape: no extra HBM pass
    yp2 = y_pred_flat.reshape(rows, LANES)

    tile_rows = min(TILE_ROWS, rows)         # rows % 8 == 0, so tile_rows % 8 == 0
    nb = -(-rows // tile_rows)               # number of real row-blocks
    per_core = -(-nb // NCORES)              # inner (arbitrary) grid extent
    need_mask = (NCORES * per_core * tile_rows) != rows

    if NCORES * per_core > nb:
        # Clamp logical block index into range; clamped (duplicate) blocks are
        # fully masked out inside the kernel, so no double counting.
        def in_map(c, i):
            return (jnp.minimum(c * per_core + i, nb - 1), 0)
    else:
        def in_map(c, i):
            return (c * per_core + i, 0)

    kernel = _make_sums_kernel(tile_rows, per_core, rows, need_mask)

    partials = pl.pallas_call(
        kernel,
        out_shape=jax.ShapeDtypeStruct((NCORES, 3, SUBLANES, LANES), jnp.float32),
        grid_spec=pltpu.PrefetchScalarGridSpec(
            num_scalar_prefetch=0,
            grid=(NCORES, per_core),
            in_specs=[
                pl.BlockSpec((tile_rows, LANES), in_map),
                pl.BlockSpec((tile_rows, LANES), in_map),
            ],
            out_specs=pl.BlockSpec(
                (1, 3, SUBLANES, LANES), lambda c, i: (c, 0, 0, 0)
            ),
        ),
        compiler_params=pltpu.CompilerParams(
            dimension_semantics=("parallel", "arbitrary")
        ),
    )(yt2, yp2)

    # Tiny final reduce (2*3*8*128 elements) in plain XLA.
    sums = jnp.sum(partials, axis=(0, 2, 3))
    return sums[0], sums[1], sums[2]


def focal_tversky_loss_detailed(y_pred, y_true, smooth=1.0, gamma=0.75, alpha=0.7):
    """Matches FocalTverskyLoss_detailed.forward."""
    yt = jnp.ravel(y_true)
    yp = jnp.ravel(y_pred)
    true_pos, sum_t, sum_p = _ftl_sums(yt, yp)
    false_neg = sum_t - true_pos          # sum(yt*(1-yp)) = sum(yt) - tp
    false_pos = sum_p - true_pos          # sum((1-yt)*yp) = sum(yp) - tp
    # TODO(synk): the PyTorch module calls logger.info(tp/fn/fp) here; we just
    # return the statistics alongside the loss instead of logging.
    pt_1 = (true_pos + smooth) / (
        true_pos + alpha * false_neg + (1.0 - alpha) * false_pos + smooth
    )
    return jnp.power(1.0 - pt_1, gamma), (true_pos, false_neg, false_pos)


if __name__ == "__main__":
    key = jax.random.PRNGKey(0)
    k1, k2 = jax.random.split(key)
    # Shapes consistent with a segmentation loss: NCHW = (2, 4, 16, 16)
    y_pred = jax.nn.sigmoid(jax.random.normal(k1, (2, 4, 16, 16), jnp.float32))
    y_true = (jax.random.uniform(k2, (2, 4, 16, 16)) > 0.5).astype(jnp.float32)

    loss, (tp, fn, fp) = focal_tversky_loss_detailed(y_pred, y_true)
    jax.block_until_ready(loss)

    # Reference check in plain JAX.
    yt = jnp.ravel(y_true)
    yp = jnp.ravel(y_pred)
    tp_r = jnp.sum(yt * yp)
    fn_r = jnp.sum(yt * (1 - yp))
    fp_r = jnp.sum((1 - yt) * yp)
    pt1_r = (tp_r + 1.0) / (tp_r + 0.7 * fn_r + 0.3 * fp_r + 1.0)
    loss_r = jnp.power(1.0 - pt1_r, 0.75)

    assert jnp.allclose(loss, loss_r, rtol=1e-5, atol=1e-5), (loss, loss_r)
    assert jnp.allclose(tp, tp_r, rtol=1e-5, atol=1e-4), (tp, tp_r)
    assert jnp.allclose(fn, fn_r, rtol=1e-5, atol=1e-4), (fn, fn_r)
    assert jnp.allclose(fp, fp_r, rtol=1e-5, atol=1e-4), (fp, fp_r)
    print("KERNEL_OK")
</pallas_src>

<mosaic_0001>
module attributes {stable_mosaic.version = 11 : i64} {
  func.func @kernel(%arg0: i32, %arg1: i32, %arg2: memref<16x128xf32, #tpu.memory_space<vmem>>, %arg3: memref<16x128xf32, #tpu.memory_space<vmem>>, %arg4: memref<1x3x8x128xf32, #tpu.memory_space<vmem>>) attributes {dimension_semantics = [#tpu.dimension_semantics<parallel>, #tpu.dimension_semantics<arbitrary>], iteration_bounds = array<i64: 2, 1>, scalar_prefetch = 0 : i64, scratch_operands = 0 : i64, tpu.core_type = #tpu.core_type<tc>, window_params = [{transform_indices = @transform_0, window_bounds = array<i64: 16, 128>}, {transform_indices = @transform_1, window_bounds = array<i64: 16, 128>}, {transform_indices = @transform_2, window_bounds = array<i64: 1, 3, 8, 128>}]} {
    %c0_i32 = arith.constant 0 : i32
    %0 = arith.cmpi eq, %arg1, %c0_i32 : i32
    %1 = arith.extui %0 : i1 to i32
    %c0_i32_0 = arith.constant 0 : i32
    %2 = arith.cmpi ne, %1, %c0_i32_0 : i32
    scf.if %2 {
      %cst_31 = arith.constant 0.000000e+00 : f32
      %40 = vector.broadcast %cst_31 : f32 to vector<1x3x8x128xf32>
      %c0_32 = arith.constant 0 : index
      %c0_33 = arith.constant 0 : index
      %c0_34 = arith.constant 0 : index
      %c0_35 = arith.constant 0 : index
      %41 = vector.load %arg4[%c0_32, %c0_33, %c0_34, %c0_35] : memref<1x3x8x128xf32, #tpu.memory_space<vmem>>, vector<1x3x8x128xf32>
      tpu.vector_store %arg4[%c0_32, %c0_33, %c0_34, %c0_35], %40 {strides = array<i32>} : memref<1x3x8x128xf32, #tpu.memory_space<vmem>>, vector<1x3x8x128xf32>,
    } else {
    }
    %c0 = arith.constant 0 : index
    %c0_1 = arith.constant 0 : index
    %3 = vector.load %arg2[%c0, %c0_1] : memref<16x128xf32, #tpu.memory_space<vmem>>, vector<16x128xf32>
    %c0_2 = arith.constant 0 : index
    %c0_3 = arith.constant 0 : index
    %4 = vector.load %arg3[%c0_2, %c0_3] : memref<16x128xf32, #tpu.memory_space<vmem>>, vector<16x128xf32>
    %c1_i32 = arith.constant 1 : i32
    %5 = arith.muli %arg0, %c1_i32 : i32
    %6 = arith.addi %5, %arg1 : i32
    %c16_i32 = arith.constant 16 : i32
    %7 = arith.muli %6, %c16_i32 : i32
    %c16_i32_4 = arith.constant 16 : i32
    %8 = arith.subi %c16_i32_4, %7 : i32
    %9 = tpu.iota {dimensions = array<i32: 0>} : vector<16x128xi32>
    %10 = vector.broadcast %8 : i32 to vector<16x128xi32>
    %11 = arith.cmpi slt, %9, %10 : vector<16x128xi32>
    %cst = arith.constant 0.000000e+00 : f32
    %12 = vector.broadcast %cst : f32 to vector<16x128xf32>
    %13 = arith.select %11, %3, %12 : vector<16x128xi1>, vector<16x128xf32>
    %cst_5 = arith.constant 0.000000e+00 : f32
    %14 = vector.broadcast %cst_5 : f32 to vector<16x128xf32>
    %15 = arith.select %11, %4, %14 : vector<16x128xi1>, vector<16x128xf32>
    %16 = vector.shape_cast %13 : vector<16x128xf32> to vector<2x8x128xf32>
    %17 = vector.shape_cast %15 : vector<16x128xf32> to vector<2x8x128xf32>
    %c0_6 = arith.constant 0 : index
    %c0_7 = arith.constant 0 : index
    %c0_8 = arith.constant 0 : index
    %c0_9 = arith.constant 0 : index
    %18 = vector.load %arg4[%c0_6, %c0_7, %c0_8, %c0_9] : memref<1x3x8x128xf32, #tpu.memory_space<vmem>>, vector<1x1x8x128xf32>
    %19 = vector.shape_cast %18 : vector<1x1x8x128xf32> to vector<8x128xf32>
    %20 = arith.mulf %16, %17 : vector<2x8x128xf32>
    %cst_10 = arith.constant dense<0.000000e+00> : vector<8x128xf32>
    %21 = vector.multi_reduction <add>, %20, %cst_10 [0] : vector<2x8x128xf32> to vector<8x128xf32>
    %22 = arith.addf %19, %21 : vector<8x128xf32>
    %c0_11 = arith.constant 0 : index
    %c0_12 = arith.constant 0 : index
    %c0_13 = arith.constant 0 : index
    %c0_14 = arith.constant 0 : index
    %23 = vector.load %arg4[%c0_11, %c0_12, %c0_13, %c0_14] : memref<1x3x8x128xf32, #tpu.memory_space<vmem>>, vector<1x1x8x128xf32>
    %24 = vector.shape_cast %23 : vector<1x1x8x128xf32> to vector<8x128xf32>
    %25 = vector.shape_cast %22 : vector<8x128xf32> to vector<1x1x8x128xf32>
    tpu.vector_store %arg4[%c0_11, %c0_12, %c0_13, %c0_14], %25 {strides = array<i32>} : memref<1x3x8x128xf32, #tpu.memory_space<vmem>>, vector<1x1x8x128xf32>,
    %c0_15 = arith.constant 0 : index
    %c1 = arith.constant 1 : index
    %c0_16 = arith.constant 0 : index
    %c0_17 = arith.constant 0 : index
    %26 = vector.load %arg4[%c0_15, %c1, %c0_16, %c0_17] : memref<1x3x8x128xf32, #tpu.memory_space<vmem>>, vector<1x1x8x128xf32>
    %27 = vector.shape_cast %26 : vector<1x1x8x128xf32> to vector<8x128xf32>
    %cst_18 = arith.constant dense<0.000000e+00> : vector<8x128xf32>
    %28 = vector.multi_reduction <add>, %16, %cst_18 [0] : vector<2x8x128xf32> to vector<8x128xf32>
    %29 = arith.addf %27, %28 : vector<8x128xf32>
    %c0_19 = arith.constant 0 : index
    %c1_20 = arith.constant 1 : index
    %c0_21 = arith.constant 0 : index
    %c0_22 = arith.constant 0 : index
    %30 = vector.load %arg4[%c0_19, %c1_20, %c0_21, %c0_22] : memref<1x3x8x128xf32, #tpu.memory_space<vmem>>, vector<1x1x8x128xf32>
    %31 = vector.shape_cast %30 : vector<1x1x8x128xf32> to vector<8x128xf32>
    %32 = vector.shape_cast %29 : vector<8x128xf32> to vector<1x1x8x128xf32>
    tpu.vector_store %arg4[%c0_19, %c1_20, %c0_21, %c0_22], %32 {strides = array<i32>} : memref<1x3x8x128xf32, #tpu.memory_space<vmem>>, vector<1x1x8x128xf32>,
    %c0_23 = arith.constant 0 : index
    %c2 = arith.constant 2 : index
    %c0_24 = arith.constant 0 : index
    %c0_25 = arith.constant 0 : index
    %33 = vector.load %arg4[%c0_23, %c2, %c0_24, %c0_25] : memref<1x3x8x128xf32, #tpu.memory_space<vmem>>, vector<1x1x8x128xf32>
    %34 = vector.shape_cast %33 : vector<1x1x8x128xf32> to vector<8x128xf32>
    %cst_26 = arith.constant dense<0.000000e+00> : vector<8x128xf32>
    %35 = vector.multi_reduction <add>, %17, %cst_26 [0] : vector<2x8x128xf32> to vector<8x128xf32>
    %36 = arith.addf %34, %35 : vector<8x128xf32>
    %c0_27 = arith.constant 0 : index
    %c2_28 = arith.constant 2 : index
    %c0_29 = arith.constant 0 : index
    %c0_30 = arith.constant 0 : index
    %37 = vector.load %arg4[%c0_27, %c2_28, %c0_29, %c0_30] : memref<1x3x8x128xf32, #tpu.memory_space<vmem>>, vector<1x1x8x128xf32>
    %38 = vector.shape_cast %37 : vector<1x1x8x128xf32> to vector<8x128xf32>
    %39 = vector.shape_cast %36 : vector<8x128xf32> to vector<1x1x8x128xf32>
    tpu.vector_store %arg4[%c0_27, %c2_28, %c0_29, %c0_30], %39 {strides = array<i32>} : memref<1x3x8x128xf32, #tpu.memory_space<vmem>>, vector<1x1x8x128xf32>,
    return
  }
  func.func @transform_0(%arg0: i32, %arg1: i32) -> (i32, i32) {
    %c1_i32 = arith.constant 1 : i32
    %0 = arith.muli %arg0, %c1_i32 : i32
    %1 = arith.addi %0, %arg1 : i32
    %c0_i32 = arith.constant 0 : i32
    %2 = arith.minsi %1, %c0_i32 : i32
    %c0_i32_0 = arith.constant 0 : i32
    %c0_i32_1 = arith.constant 0 : i32
    return %2, %c0_i32_0 : i32, i32
  }
  func.func @transform_1(%arg0: i32, %arg1: i32) -> (i32, i32) {
    %c1_i32 = arith.constant 1 : i32
    %0 = arith.muli %arg0, %c1_i32 : i32
    %1 = arith.addi %0, %arg1 : i32
    %c0_i32 = arith.constant 0 : i32
    %2 = arith.minsi %1, %c0_i32 : i32
    %c0_i32_0 = arith.constant 0 : i32
    %c0_i32_1 = arith.constant 0 : i32
    return %2, %c0_i32_0 : i32, i32
  }
  func.func @transform_2(%arg0: i32, %arg1: i32) -> (i32, i32, i32, i32) {
    %c0_i32 = arith.constant 0 : i32
    %c0_i32_0 = arith.constant 0 : i32
    %c0_i32_1 = arith.constant 0 : i32
    %c0_i32_2 = arith.constant 0 : i32
    return %arg0, %c0_i32, %c0_i32_0, %c0_i32_1 : i32, i32, i32, i32
  }
}

</mosaic_0001>

<bundles_post_ra>
// kernel: tpu_custom_call.1
= control target key start
LH: loop header
LB: loop body
LE: loop exit
PB: predicated region body
PF: predicated region fallthrough
CT: control target
= control target key end

     0   :  { %7 = vsyncpa [#allocation3], 0  ;;  %s888_s0 = inlined_call_operand.hbm [shape: f32[16,128], index: 0, kind: input, shape index: {}]   ;;  %s889_s1 = inlined_call_operand.hbm [shape: f32[16,128], index: 1, kind: input, shape index: {}]   ;;  %s890_s2 = inlined_call_operand.hbm [shape: f32[2,3,8,128], index: 2, kind: output, shape index: {}]  }
   0x1   :  { %9 = vsyncpa [#allocation3 + $0x1], 0 }
   0x2   :  { %10 = vsyncpa [#allocation6], 0 }
   0x3   :  { %12 = vsyncpa [#allocation6 + $0x1], 0 }
   0x4   :  { %13 = vsyncpa [#allocation4], 0 }
   0x5   :  { %15 = vsyncpa [#allocation4 + $0x1], 0  ;;  %s715_s9 = smov 0   ;;  %s717_s10 = smov 0  }
   0x6   :  { %s719_s11 = smov 0   ;;  %s721_s12 = smov 0  }
   0x7   :  { %s723_s13 = smov 0   ;;  %s725_s14 = smov 0  }
   0x8   :  { %s727_s15 = smov 0   ;;  %s729_s16 = smov 0  }
   0x9 LB: > { %s404_s17 = sadd.s32 4294967295, %s692_s16   ;;  %s405_s18 = sadd.s32 4294967294, %s692_s16   ;;  %s692_s16 = sphi %s729_s16, %s21_s16   ;;  %s688_s15 = sphi %s727_s15, %s902_s15   ;;  %s684_s14 = sphi %s725_s14, %s901_s14   ;;  %s680_s13 = sphi %s723_s13, %s878_s13   ;;  %s676_s12 = sphi %s721_s12, %s900_s12   ;;  %s672_s11 = sphi %s719_s11, %s899_s11   ;;  %s668_s10 = sphi %s717_s10, %s898_s10   ;;  %s664_s9 = sphi %s715_s9, %s897_s9  }
   0xa   : > { %s33_s19 = sadd.s32 1, %s688_s15  ;;  %p661_p1 = scmp.ne.s32.totalorder %s680_s13, 0 }
   0xb   : > { %p35_p0 = scmp.ge.s32.totalorder %s33_s19, 2  ;;  %p54_p2 = scmp.eq.s32.totalorder %s692_s16, 0 }
   0xc   : > { %p59_p3 = scmp.ne.s32.totalorder %s680_s13, %s676_s12  ;;  %p60_p5 = scmp.eq.s32.totalorder %s404_s17, 0 }
   0xd   : > { %s904_s19 = smov (%p35_p0, %s33_s19), 0  ;;  %p761_p4 = por %p661_p1, %p54_p2 }
   0xe   : > { %p765_p6 = por %p60_p5, %p59_p3  ;;  %s101_s22 = ssub.s32 %s688_s15, %s904_s19 }
   0xf   : > { %p102_p7 = scmp.eq.s32.totalorder %s101_s22, 0  ;;  %s104_s23 = sadd.s32 1, %s672_s11 }
  0x10   : > { %p114_p8 = scmp.ne.s32.totalorder %s672_s11, %s668_s10  ;;  %p115_p9 = scmp.eq.s32.totalorder %s404_s17, 1 }
  0x11   : > { %s773_s24 = scalar_select %p102_p7, %s672_s11, %s104_s23  }
  0x12   : > { %p120_p10 = scmp.ne.s32.totalorder %s668_s10, %s664_s9  ;;  %p121_p11 = scmp.eq.s32.totalorder %s405_s18, 1 }
  0x13   : > { %p779_p12 = por %p115_p9, %p114_p8  ;;  %p407_p13 = scmp.ge.s32.totalorder %s692_s16, 2 }
  0x14   : > { %p784_p0 = por %p121_p11, %p120_p10  ;;  %p446_p1 = scmp.lt.s32.totalorder %s692_s16, 2 }
  0x15   : > { %s154_s29 = sshll.u32 %s888_s0, 4  ;;  %s694_s30 = smov [#allocation2]   ;;  %s155_s29 = int_to_ptr.hbm [resolvable:$true] %s154_s29 }
  0x16   : > { %s156_s3 = sshll.u32 %s694_s30, 4  ;;  %p794_p2 = pnand %p446_p1, %p761_p4  ;;  %s157_s3 = int_to_ptr.vmem [resolvable:$true] %s156_s3 }
  0x17   : > { %p414_p3 = scmp.ge.s32.totalorder %s692_s16, 1  ;;  %p189_p5 = scmp.lt.s32.totalorder %s692_s16, 3 }
  0x18   : > { %s525_s5 = sshra.s32 %s155_s29, 4  ;;  %p529_p8 = pneg %p794_p2  ;;  %s526_s5 = int_to_ptr.hbm [resolvable:$true] %s525_s5 }
  0x19   : > { %s527_s6 = scalar_lea.hbm %s526_s5, 16  ;;  %s532_s12 = scalar_lea.hbm %s888_s0, 16 }
  0x1a   : > { %p528_p7 = scmp.ne.s32.totalorder %s526_s5, %s527_s6  ;;  %p534_p4 = scmp.lt.s32.totalorder %s532_s12, %s527_s6 }
  0x1c   : > { %p530_p9 = pnand %p529_p8, %p528_p7 }
  0x1e   : > { %p531_p10 = pneg %p530_p9 }
  0x20   : > { %p536_p11 = pnand %p534_p4, %p531_p10 }
  0x22   : > { %539 = shalt.err (!%p536_p11)
}
  0x23   : > { %s695_s17 = smov 128   ;;  %s696_s18 = smov 8  }
  0x24   : > { %438 = dma.hbm_to_vmem [thread:$0]  (!%p794_p2), %s155_s29, 256, %s157_s3, [#allocation3], %s695_s17, %s695_s17, %s696_s18  }
  0x25   : > { %p814_p1 = pnand %p414_p3, %p189_p5  ;;  %s179_s27 = sshll.u32 %s889_s1, 4  ;;  %s180_s27 = int_to_ptr.hbm [resolvable:$true] %s179_s27 }
  0x26   : > { %s697_s28 = smov [#allocation5]   ;;  %s555_s5 = sshra.s32 %s180_s27, 4  ;;  %s556_s5 = int_to_ptr.hbm [resolvable:$true] %s555_s5 }
  0x27   : > { %s181_s30 = sshll.u32 %s697_s28, 4  ;;  %s557_s6 = scalar_lea.hbm %s556_s5, 16  ;;  %s182_s30 = int_to_ptr.vmem [resolvable:$true] %s181_s30 }
  0x28   : > { %p558_p7 = scmp.ne.s32.totalorder %s556_s5, %s557_s6  ;;  %s562_s7 = scalar_lea.hbm %s889_s1, 16 }
  0x29   : > { %p564_p3 = scmp.lt.s32.totalorder %s562_s7, %s557_s6 }
  0x2a   : > { %p560_p9 = pnand %p558_p7, %p529_p8 }
  0x2c   : > { %p561_p10 = pneg %p560_p9 }
  0x2e   : > { %p566_p5 = pnand %p564_p3, %p561_p10 }
  0x30   : > { %569 = shalt.err (!%p566_p5)
}
  0x31   : > { %441 = dma.hbm_to_vmem [thread:$0]  (!%p794_p2), %s180_s27, 256, %s182_s30, [#allocation6], %s695_s17, %s695_s17, %s696_s18  }
  0x32   : > { %193 = sbr.rel (%p814_p1) target bundleno = 77 (0x4d), region = 28  ;;  %s195_s8 = sand.u32 (!%p814_p1), 1, %s680_s13  }
  0x33   : > { %s415_s12 = sshll.u32 (!%p814_p1), %s195_s8, 4  ;;  %s196_s22 = scalar_lea.sflag (!%p814_p1), [#allocation3], %s195_s8 }
  0x34   : > { %s199_s23 = scalar_lea.vmem (!%p814_p1), [#allocation2], %s415_s12 }
  0x37   : > { %650 = dma.done.wait (%p765_p6), %s196_s22, 256  }
  0x38   : > { %652 = vsyncadd (%p765_p6), %s196_s22, 4294967040  ;;  %s206_s28 = scalar_lea.sflag [#allocation6], %s195_s8  ;;  %s209_s5 = scalar_lea.vmem [#allocation5], %s415_s12 }
  0x39   : > { %654 = dma.done.wait (%p765_p6), %s206_s28, 256  }
  0x3a   : > { %656 = vsyncadd (%p765_p6), %s206_s28, 4294967040  ;;  %s233_s4 = sand.u32 1, %s668_s10   ;;  %s417_s17 = sshll.u32 %s684_s14, 4  ;;  %v258_v0 = vlaneseq  ;;  %v251_v4 = vld [vmem:[%s199_s23] sm:$0xff]  ;;  %v252_v5 = vld [vmem:[%s199_s23 + $0x8] sm:$0xff] }
  0x3b   : > { %s257_s18 = ssub.s32 16, %s417_s17  ;;  %s427_s20 = smul.u32 24, %s233_s4  ;;  %v253_v6 = vld [vmem:[%s209_s5] sm:$0xff]  ;;  %v254_v7 = vld [vmem:[%s209_s5 + $0x8] sm:$0xff] }
  0x3c   : > { %v259_v1 = vshrl.u32 %v258_v0, 7  ;;  %v261_v2 = vstv %s257_s18  ;;  %s428_s27 = smul.u32 24, %s684_s14  ;;  %s285_s7 = scalar_lea.sflag [#allocation4], %s233_s4 }
  0x3d   : > { %s235_s14 = scalar_lea.vmem [#allocation7], %s427_s20  ;;  %s605_s28 = scalar_lea.hbm %s890_s2, 48 }
  0x3e   : > { %v260_v3 = vadd.s32 8, %v259_v1  ;;  %vm262_vm0 = vcmp.lt.s32.totalorder %v259_v1, %v261_v2  ;;  %s296_s6 = scalar_lea.hbm %s890_s2, %s428_s27  ;;  %s297_s29 = sshll.u32 %s235_s14, 4  ;;  %s298_s29 = int_to_ptr.vmem [resolvable:$true] %s297_s29 }
  0x3f   : > { %v264_v8 = vsel %vm262_vm0, %v251_v4, 0.0  ;;  %v266_v10 = vsel %vm262_vm0, %v253_v6, 0.0  ;;  %s299_s3 = sshll.u32 %s296_s6, 4  ;;  %s300_s3 = int_to_ptr.hbm [resolvable:$true] %s299_s3 }
  0x40   : > { %vm263_vm1 = vcmp.lt.s32.totalorder %v260_v3, %v261_v2  ;;  %v269_v12 = vmul.f32 %v266_v10, %v264_v8  ;;  %s599_s8 = sshra.s32 %s300_s3, 4  ;;  %s600_s8 = int_to_ptr.hbm [resolvable:$true] %s599_s8 }
  0x41   : > { %v265_v9 = vsel %vm263_vm1, %v252_v5, 0.0  ;;  %v267_v11 = vsel %vm263_vm1, %v254_v7, 0.0  ;;  %s601_s12 = scalar_lea.hbm %s600_s8, 24  ;;  %p606_p4 = scmp.lt.s32.totalorder %s600_s8, %s890_s2 }
  0x42   : > { %v276_v13 = vadd.f32 %v265_v9, %v264_v8  ;;  %v270_v14 = vmul.f32 %v267_v11, %v265_v9  ;;  %v281_v15 = vadd.f32 %v267_v11, %v266_v10  ;;  %p602_p6 = scmp.ne.s32.totalorder %s600_s8, %s601_s12  ;;  %p607_p11 = scmp.lt.s32.totalorder %s605_s28, %s601_s12 }
  0x44   : > { %v271_v16 = vadd.f32 %v270_v14, %v269_v12  ;;  %419 = vst [vmem:[%s235_s14 + $0x8] sm:$0xff] %v276_v13  ;;  %p603_p2 = pnand %p602_p6, %p779_p12  ;;  %p608_p1 = por %p607_p11, %p606_p4 }
  0x45   : > { %421 = vst [vmem:[%s235_s14 + $0x10] sm:$0xff] %v281_v15 }
  0x46   : > { %273 = vst [vmem:[%s235_s14] sm:$0xff] %v271_v16  ;;  %p604_p8 = pneg %p603_p2 }
  0x48   : > { %p609_p7 = pnand %p608_p1, %p604_p8 }
  0x4a   : > { %612 = shalt.err (!%p609_p7)
}
  0x4b   : > { %s698_s4 = smov 128   ;;  %s699_s18 = smov 8  }
  0x4c   : > { %433 = dma.vmem_to_hbm [thread:$0]  (%p779_p12), %s298_s29, 384, %s300_s3, %s285_s7, %s698_s4, %s698_s4, %s699_s18  }
  0x4d PF: > { %s314_s20 = sand.u32 1, %s664_s9   ;;  %p443_p9 = pnand %p407_p13, %p784_p0 }
  0x4e   : > { %s315_s27 = scalar_lea.sflag [#allocation4], %s314_s20 }
  0x4f   : > { %p444_p10 = pneg %p443_p9 }
  0x51   : > { %658 = dma.done.wait (%p444_p10), %s315_s27, 384  }
  0x52   : > { %660 = vsyncadd (%p444_p10), %s315_s27, 4294966912  ;;  %s21_s16 = sadd.s32 1, %s692_s16   ;;  %s897_s9 = smov %s668_s10 }
  0x53   : > { %p18_p3 = scmp.ge.s32.totalorder %s21_s16, 4   ;;  %s898_s10 = smov %s672_s11 }
  0x54   : > { %s899_s11 = smov %s773_s24  ;;  %s900_s12 = smov %s680_s13 }
  0x55   : > { %s878_s13 = smov 0   ;;  %s901_s14 = smov %s688_s15 }
  0x56   : > { %s902_s15 = smov %s904_s19  ;;  %20 = sbr.rel (!%p18_p3) target bundleno = 9 (0x9), region = 92 }
  0x5b   :  { %321 = vsyncpa [#allocation3], 1 }
  0x5c   :  { %323 = vsyncpa [#allocation3 + $0x1], 1 }
  0x5d   :  { %324 = vsyncpa [#allocation6], 1 }
  0x5e   :  { %326 = vsyncpa [#allocation6 + $0x1], 1 }
  0x5f   :  { %327 = vsyncpa [#allocation4], 1 }
  0x60   :  { %329 = vsyncpa [#allocation4 + $0x1], 1 }

</bundles_post_ra>
